<compile_context>
chip_gen: v6e
topology: v6e:2x2x1
jax: 0.10.0
libtpu: 0.0.40
codegen_flags: <defaults>
</compile_context>

<pallas_src>
import numpy as np
import jax
import jax.numpy as jnp
from jax import lax
from jax.experimental import pallas as pl
from jax.experimental.pallas import tpu as pltpu

_HI = jax.lax.Precision.HIGHEST


# ------------------------------------------------------------------ utilities

def _bilinear_matrix(n_out, n_in):
    """1-D bilinear interpolation matrix (align_corners=False). Rows sum to 1."""
    R = np.zeros((n_out, n_in), dtype=np.float32)
    scale = n_in / n_out
    for i in range(n_out):
        src = max(scale * (i + 0.5) - 0.5, 0.0)
        i0 = min(int(np.floor(src)), n_in - 1)
        i1 = min(i0 + 1, n_in - 1)
        lam = src - i0
        R[i, i0] += 1.0 - lam
        R[i, i1] += lam
    return R


def _pad8(n):
    return ((max(int(n), 1) + 7) // 8) * 8


def _pad128(n):
    return ((max(int(n), 1) + 127) // 128) * 128


def _vmem_capacity_bytes():
    """Physical VMEM capacity (128 MiB on v5e/v6e, 64 MiB on v7x); safe fallback."""
    try:
        info = pltpu.get_tpu_info()
        cap = int(getattr(info, "vmem_capacity_bytes", 0))
        if cap > 0:
            return cap
    except Exception:
        pass
    return 64 << 20


def _pick_col_tile(Nt, KCg, F_, budget):
    """Lane tile for the coarse gate kernel: divides Nt, 128-aligned (or full array),
    double-buffered footprint (with (8,128) padding) within budget."""
    per_col = 2 * 4 * (_pad8(KCg) + 8)                               # cat block + att out
    fixed = 2 * 4 * (_pad8(F_) * _pad128(KCg) + 3 * 8 * 128)
    cands = [d for d in range(128, Nt, 128) if Nt % d == 0] + [Nt]
    feas = [d for d in cands if fixed + d * per_col <= budget]
    return max(feas) if feas else min(cands)


def _pick_row_tile(H, W, C, Ht, Wt, budget):
    """Image-row tile for the full-resolution kernels: divides H, th*W lane-aligned
    (or whole image), double-buffered padded footprint within budget."""
    Cp = _pad8(C)
    per_row = 2 * 4 * (2 * Cp * W + 8 * W + _pad128(Ht))             # x + out + gate + Rh2
    fixed = 2 * 4 * (_pad8(Ht) * _pad128(Wt) + _pad8(Wt) * _pad128(W) + 4 * 8 * 128)
    cands = [d for d in range(1, H + 1) if H % d == 0 and ((d * W) % 128 == 0 or d == H)]
    feas = [d for d in cands if fixed + d * per_row <= budget]
    # TODO(synk): masked tail tiles would allow non-divisor row tiles here.
    return max(feas) if feas else min(cands)


# ------------------------------------------------------------------ kernels

def _gate_kernel(cat_ref, wcat_ref, btp_ref, wps_ref, bps_ref, att_ref):
    # cat_ref : (1, K+Cg, tn)  concatenated [theta 2x2/s2 patches ; coarse-upsampled g]
    # wcat    : (F, K+Cg)  fused theta+phi weights;  btp: (F, 1) fused bias
    # wps     : (F, 1) psi column;  bps: SMEM (1,) psi bias
    f = jnp.dot(wcat_ref[...], cat_ref[0],
                preferred_element_type=jnp.float32, precision=_HI) + btp_ref[...]
    f = jnp.maximum(f, 0.0)                                           # (F, tn) ReLU
    # psi 1x1 conv (single output channel) on VPU/XLU: multiply + sublane sum.
    logits = jnp.sum(f * wps_ref[...], axis=0, keepdims=True) + bps_ref[0]
    att_ref[0] = jax.nn.sigmoid(logits)                               # (1, tn) lane-dense


def _upsampled_gate(att2d_ref, rh_ref, rwT_ref):
    # Separable bilinear upsample of the coarse gate for this row tile:
    # (th, Ht) @ (Ht, Wt) @ (Wt, W) -> (th, W) -> flattened (1, th*W) to match flat x.
    tmp = jnp.dot(rh_ref[...], att2d_ref[0],
                  preferred_element_type=jnp.float32, precision=_HI)
    g2d = jnp.dot(tmp, rwT_ref[...],
                  preferred_element_type=jnp.float32, precision=_HI)
    return g2d.reshape(1, -1)


def _stats_kernel(att2d_ref, rh_ref, rwT_ref, x_ref, ww_ref, bw_ref, sum_ref, sq_ref):
    # Fused: gate upsample + gating multiply + W 1x1 conv + per-batch BN sums.
    gate = _upsampled_gate(att2d_ref, rh_ref, rwT_ref)                # (1, th*W)
    y = gate * x_ref[0]                                               # (C, th*W)
    wy = jnp.dot(ww_ref[...], y,
                 preferred_element_type=jnp.float32, precision=_HI) + bw_ref[...]

    @pl.when(pl.program_id(1) == 0)
    def _():
        sum_ref[...] = jnp.zeros_like(sum_ref)
        sq_ref[...] = jnp.zeros_like(sq_ref)

    sum_ref[0] += jnp.sum(wy, axis=-1, keepdims=True)                 # (C, 1)
    sq_ref[0] += jnp.sum(wy * wy, axis=-1, keepdims=True)


def _norm_kernel(att2d_ref, rh_ref, rwT_ref, x_ref, ww_ref, bw_ref,
                 scale_ref, shift_ref, out_ref, gate_ref):
    # Recompute gate / y / wy (cheaper than a wy HBM round trip), then BN-normalize.
    gate = _upsampled_gate(att2d_ref, rh_ref, rwT_ref)                # (1, th*W)
    y = gate * x_ref[0]
    wy = jnp.dot(ww_ref[...], y,
                 preferred_element_type=jnp.float32, precision=_HI) + bw_ref[...]
    out_ref[0] = wy * scale_ref[...] + shift_ref[...]                 # (C, th*W)
    gate_ref[0] = gate                                                # (1, th*W)


# ------------------------------------------------------------------ wrapper

def grid_attention_forward(x_nchw, g_nchw, params):
    B, C, H, W = x_nchw.shape
    _, Cg, Hg, Wg = g_nchw.shape
    kh = kw = 2                                      # sub_sample_factor / theta kernel
    Ht, Wt = H // kh, W // kw
    Nt, Nf = Ht * Wt, H * W
    F_ = params["w_theta"].shape[0]                  # inter_channels
    K = kh * kw * C

    vmem_cap = _vmem_capacity_bytes()
    vmem_limit = min(int(0.6 * vmem_cap), 112 << 20)
    tile_budget = int(0.7 * vmem_limit)

    # ---- wrapper-side glue: coarse-resolution passes and free reshapes only ---------
    x_flat = x_nchw.reshape(B, C, Nf)                # free (contiguous)

    # theta 2x2/s2 patches, channels-major, feature order (c, dh, dw)
    xp = (x_nchw.reshape(B, C, Ht, kh, Wt, kw)
                .transpose(0, 1, 3, 5, 2, 4)
                .reshape(B, K, Nt))

    Rh1 = jnp.asarray(_bilinear_matrix(Ht, Hg))      # (Ht, Hg)
    Rw1 = jnp.asarray(_bilinear_matrix(Wt, Wg))      # (Wt, Wg)
    Rh2 = jnp.asarray(_bilinear_matrix(H, Ht))       # (H, Ht)
    Rw2T = jnp.asarray(_bilinear_matrix(W, Wt).T)    # (Wt, W)

    # 1x1 conv commutes with bilinear interpolation (rows sum to 1): upsample g once at
    # coarse resolution and run the phi projection inside K1.
    gup = jnp.einsum("th,bchw->bctw", Rh1, g_nchw, precision=_HI)
    gup = jnp.einsum("sw,bctw->bcts", Rw1, gup, precision=_HI).reshape(B, Cg, Nt)

    cat = jnp.concatenate([xp, gup], axis=1)         # (B, K+Cg, Nt)

    # fused theta+phi weights (single MXU pass), psi column, W conv, BN params
    wcat = jnp.concatenate([params["w_theta"].reshape(F_, K),
                            params["w_phi"][:, :, 0, 0]], axis=1)     # (F, K+Cg)
    btp = (params["b_theta"] + params["b_phi"]).reshape(F_, 1)
    wps = params["w_psi"][0, :, 0, 0].reshape(F_, 1)
    bps = params["b_psi"].reshape(1)
    ww = params["w_W"][:, :, 0, 0]                                    # (C, C)
    bw = params["b_W"].reshape(C, 1)
    gamma = params["bn_gamma"].reshape(C, 1)
    beta = params["bn_beta"].reshape(C, 1)

    # ---- K1: coarse attention gate (fused theta+phi matmul, lane-dense output) ------
    tn = _pick_col_tile(Nt, K + Cg, F_, tile_budget)
    att = pl.pallas_call(
        _gate_kernel,
        out_shape=jax.ShapeDtypeStruct((B, 1, Nt), jnp.float32),
        grid=(B, Nt // tn),
        in_specs=[pl.BlockSpec((1, K + Cg, tn), lambda b, t: (b, 0, t)),
                  pl.BlockSpec((F_, K + Cg), lambda b, t: (0, 0)),
                  pl.BlockSpec((F_, 1), lambda b, t: (0, 0)),
                  pl.BlockSpec((F_, 1), lambda b, t: (0, 0)),
                  pl.BlockSpec(memory_space=pltpu.MemorySpace.SMEM)],
        out_specs=pl.BlockSpec((1, 1, tn), lambda b, t: (b, 0, t)),
        compiler_params=pltpu.CompilerParams(
            dimension_semantics=("parallel", "parallel"),
            vmem_limit_bytes=vmem_limit),
    )(cat, wcat, btp, wps, bps)
    att2d = att.reshape(B, Ht, Wt)                   # free (contiguous); tiny resident input

    # ---- K2: fused gate-upsample + gating + W conv -> per-batch BN sums only --------
    th = _pick_row_tile(H, W, C, Ht, Wt, tile_budget)
    Tg = H // th
    ssum, ssq = pl.pallas_call(
        _stats_kernel,
        out_shape=(jax.ShapeDtypeStruct((B, C, 1), jnp.float32),
                   jax.ShapeDtypeStruct((B, C, 1), jnp.float32)),
        grid=(B, Tg),
        in_specs=[pl.BlockSpec((1, Ht, Wt), lambda b, t: (b, 0, 0)),
                  pl.BlockSpec((th, Ht), lambda b, t: (t, 0)),
                  pl.BlockSpec((Wt, W), lambda b, t: (0, 0)),
                  pl.BlockSpec((1, C, th * W), lambda b, t: (b, 0, t)),
                  pl.BlockSpec((C, C), lambda b, t: (0, 0)),
                  pl.BlockSpec((C, 1), lambda b, t: (0, 0))],
        out_specs=(pl.BlockSpec((1, C, 1), lambda b, t: (b, 0, 0)),
                   pl.BlockSpec((1, C, 1), lambda b, t: (b, 0, 0))),
        compiler_params=pltpu.CompilerParams(
            dimension_semantics=("parallel", "arbitrary"),
            vmem_limit_bytes=vmem_limit),
    )(att2d, Rh2, Rw2T, x_flat, ww, bw)

    # ---- BN batch statistics (training mode, biased variance; tiny) -----------------
    cnt = float(B * Nf)
    mean = jnp.sum(ssum, axis=0) / cnt                                # (C, 1)
    var = jnp.maximum(jnp.sum(ssq, axis=0) / cnt - mean * mean, 0.0)
    scale = gamma * lax.rsqrt(var + 1e-5)
    shift = beta - mean * scale

    # ---- K3: recompute gate / y / W-conv, normalize, emit W_y and the gate ----------
    out, gate_full = pl.pallas_call(
        _norm_kernel,
        out_shape=(jax.ShapeDtypeStruct((B, C, Nf), jnp.float32),
                   jax.ShapeDtypeStruct((B, 1, Nf), jnp.float32)),
        grid=(B, Tg),
        in_specs=[pl.BlockSpec((1, Ht, Wt), lambda b, t: (b, 0, 0)),
                  pl.BlockSpec((th, Ht), lambda b, t: (t, 0)),
                  pl.BlockSpec((Wt, W), lambda b, t: (0, 0)),
                  pl.BlockSpec((1, C, th * W), lambda b, t: (b, 0, t)),
                  pl.BlockSpec((C, C), lambda b, t: (0, 0)),
                  pl.BlockSpec((C, 1), lambda b, t: (0, 0)),
                  pl.BlockSpec((C, 1), lambda b, t: (0, 0)),
                  pl.BlockSpec((C, 1), lambda b, t: (0, 0))],
        out_specs=(pl.BlockSpec((1, C, th * W), lambda b, t: (b, 0, t)),
                   pl.BlockSpec((1, 1, th * W), lambda b, t: (b, 0, t))),
        compiler_params=pltpu.CompilerParams(
            dimension_semantics=("parallel", "parallel"),
            vmem_limit_bytes=vmem_limit),
    )(att2d, Rh2, Rw2T, x_flat, ww, bw, scale, shift)

    W_y = out.reshape(B, C, H, W)                    # free (contiguous)
    sigm_psi_f = gate_full.reshape(B, 1, H, W)       # free (contiguous)
    return W_y, sigm_psi_f


# ------------------------------------------------------------------ reference (plain JAX)

def reference_forward(x, g, params):
    B, C, H, W = x.shape
    _, _, Hg, Wg = g.shape
    Ht, Wt = H // 2, W // 2
    dn = ("NCHW", "OIHW", "NCHW")
    theta = lax.conv_general_dilated(x, params["w_theta"], (2, 2), "VALID",
                                     dimension_numbers=dn, precision=_HI) \
        + params["b_theta"].reshape(1, -1, 1, 1)
    phi = lax.conv_general_dilated(g, params["w_phi"], (1, 1), "VALID",
                                   dimension_numbers=dn, precision=_HI) \
        + params["b_phi"].reshape(1, -1, 1, 1)
    Rh1 = jnp.asarray(_bilinear_matrix(Ht, Hg))
    Rw1 = jnp.asarray(_bilinear_matrix(Wt, Wg))
    Rh2 = jnp.asarray(_bilinear_matrix(H, Ht))
    Rw2 = jnp.asarray(_bilinear_matrix(W, Wt))
    phi_up = jnp.einsum("tp,bcpq,sq->bcts", Rh1, phi, Rw1, precision=_HI)
    f = jax.nn.relu(theta + phi_up)
    psi = lax.conv_general_dilated(f, params["w_psi"], (1, 1), "VALID",
                                   dimension_numbers=dn, precision=_HI) \
        + params["b_psi"].reshape(1, -1, 1, 1)
    att = jax.nn.sigmoid(psi)
    att_full = jnp.einsum("tp,bcpq,sq->bcts", Rh2, att, Rw2, precision=_HI)
    y = att_full * x
    wy = lax.conv_general_dilated(y, params["w_W"], (1, 1), "VALID",
                                  dimension_numbers=dn, precision=_HI) \
        + params["b_W"].reshape(1, -1, 1, 1)
    mean = wy.mean(axis=(0, 2, 3), keepdims=True)
    var = ((wy - mean) ** 2).mean(axis=(0, 2, 3), keepdims=True)
    out = (params["bn_gamma"].reshape(1, -1, 1, 1) * (wy - mean)
           * lax.rsqrt(var + 1e-5) + params["bn_beta"].reshape(1, -1, 1, 1))
    return out, att_full


# ------------------------------------------------------------------ params + main

def _make_params(key, in_ch, gate_ch, inter_ch):
    ks = jax.random.split(key, 10)

    def kaiming(k, shape):
        fan_in = int(np.prod(shape[1:]))
        return jax.random.normal(k, shape, jnp.float32) * np.sqrt(2.0 / fan_in)

    def bias(k, shape, fan_in):
        b = 1.0 / np.sqrt(fan_in)
        return jax.random.uniform(k, shape, jnp.float32, -b, b)

    return {
        "w_theta": kaiming(ks[0], (inter_ch, in_ch, 2, 2)),
        "b_theta": bias(ks[1], (inter_ch,), in_ch * 4),
        "w_phi": kaiming(ks[2], (inter_ch, gate_ch, 1, 1)),
        "b_phi": bias(ks[3], (inter_ch,), gate_ch),
        "w_psi": kaiming(ks[4], (1, inter_ch, 1, 1)),
        "b_psi": bias(ks[5], (1,), inter_ch),
        "w_W": kaiming(ks[6], (in_ch, in_ch, 1, 1)),
        "b_W": bias(ks[7], (in_ch,), in_ch),
        "bn_gamma": 1.0 + 0.02 * jax.random.normal(ks[8], (in_ch,), jnp.float32),
        "bn_beta": jnp.zeros((in_ch,), jnp.float32),
    }


if __name__ == "__main__":
    B, C, H, W = 2, 4, 16, 16          # x: (B, in_channels, H, W)
    Cg, Hg, Wg = 4, 8, 8               # g: (B, gating_channels, Hg, Wg)
    inter = C // 2                     # inter_channels default = in_channels // 2

    key = jax.random.PRNGKey(0)
    kx, kg, kp = jax.random.split(key, 3)
    x = jax.random.normal(kx, (B, C, H, W), jnp.float32)
    g = jax.random.normal(kg, (B, Cg, Hg, Wg), jnp.float32)
    params = _make_params(kp, C, Cg, inter)

    W_y, sigm_psi_f = grid_attention_forward(x, g, params)
    W_y = jax.block_until_ready(W_y)
    sigm_psi_f = jax.block_until_ready(sigm_psi_f)

    W_y_ref, att_ref = reference_forward(x, g, params)
    np.testing.assert_allclose(np.asarray(W_y), np.asarray(W_y_ref), atol=2e-3, rtol=2e-3)
    np.testing.assert_allclose(np.asarray(sigm_psi_f), np.asarray(att_ref), atol=2e-3, rtol=2e-3)

    print("KERNEL_OK")
</pallas_src>

<mosaic_0001>
module attributes {stable_mosaic.version = 11 : i64} {
  func.func @_gate_kernel(%arg0: i32, %arg1: i32, %arg2: memref<1x20x64xf32, #tpu.memory_space<vmem>>, %arg3: memref<2x20xf32, #tpu.memory_space<vmem>>, %arg4: memref<2x1xf32, #tpu.memory_space<vmem>>, %arg5: memref<2x1xf32, #tpu.memory_space<vmem>>, %arg6: memref<1xf32, #tpu.memory_space<smem>>, %arg7: memref<1x1x64xf32, #tpu.memory_space<vmem>>) attributes {dimension_semantics = [#tpu.dimension_semantics<parallel>, #tpu.dimension_semantics<parallel>], iteration_bounds = array<i64: 2, 1>, scalar_prefetch = 0 : i64, scratch_operands = 0 : i64, tpu.core_type = #tpu.core_type<tc>, window_params = [{transform_indices = @transform_0, window_bounds = array<i64: 1, 20, 64>}, {pipeline_mode = #tpu.pipeline_mode<synchronous>, transform_indices = @transform_1, window_bounds = array<i64: 2, 20>}, {pipeline_mode = #tpu.pipeline_mode<synchronous>, transform_indices = @transform_2, window_bounds = array<i64: 2, 1>}, {pipeline_mode = #tpu.pipeline_mode<synchronous>, transform_indices = @transform_3, window_bounds = array<i64: 2, 1>}, {transform_indices = @transform_4, window_bounds = array<i64: 1>}, {transform_indices = @transform_5, window_bounds = array<i64: 1, 1, 64>}]} {
    %c0 = arith.constant 0 : index
    %c0_0 = arith.constant 0 : index
    %0 = vector.load %arg3[%c0, %c0_0] : memref<2x20xf32, #tpu.memory_space<vmem>>, vector<2x20xf32>
    %c0_1 = arith.constant 0 : index
    %c0_2 = arith.constant 0 : index
    %c0_3 = arith.constant 0 : index
    %1 = vector.load %arg2[%c0_1, %c0_2, %c0_3] : memref<1x20x64xf32, #tpu.memory_space<vmem>>, vector<1x20x64xf32>
    %2 = vector.shape_cast %1 : vector<1x20x64xf32> to vector<20x64xf32>
    %cst = arith.constant dense<0.000000e+00> : vector<2x64xf32>
    %3 = tpu.matmul %0, %2, %cst {dimension_numbers = #tpu.dot_dimension_numbers<[1], [0], [0], [1], [0, 0, 1, 1], [], []>, precision = #tpu.contract_precision<fp32>} : vector<2x20xf32>, vector<20x64xf32>, vector<2x64xf32> -> vector<2x64xf32>
    %c0_4 = arith.constant 0 : index
    %c0_5 = arith.constant 0 : index
    %4 = vector.load %arg4[%c0_4, %c0_5] : memref<2x1xf32, #tpu.memory_space<vmem>>, vector<2x1xf32>
    %5 = vector.broadcast %4 : vector<2x1xf32> to vector<2x64xf32>
    %6 = arith.addf %3, %5 : vector<2x64xf32>
    %cst_6 = arith.constant 0.000000e+00 : f32
    %7 = vector.broadcast %cst_6 : f32 to vector<2x64xf32>
    %8 = arith.maximumf %6, %7 : vector<2x64xf32>
    %c0_7 = arith.constant 0 : index
    %c0_8 = arith.constant 0 : index
    %9 = vector.load %arg5[%c0_7, %c0_8] : memref<2x1xf32, #tpu.memory_space<vmem>>, vector<2x1xf32>
    %10 = vector.broadcast %9 : vector<2x1xf32> to vector<2x64xf32>
    %11 = arith.mulf %8, %10 : vector<2x64xf32>
    %cst_9 = arith.constant dense<0.000000e+00> : vector<64xf32>
    %12 = vector.multi_reduction <add>, %11, %cst_9 [0] : vector<2x64xf32> to vector<64xf32>
    %13 = vector.shape_cast %12 : vector<64xf32> to vector<1x64xf32>
    %c0_10 = arith.constant 0 : index
    %14 = memref.load %arg6[%c0_10] : memref<1xf32, #tpu.memory_space<smem>>
    %15 = vector.broadcast %14 : f32 to vector<1x64xf32>
    %16 = arith.addf %13, %15 : vector<1x64xf32>
    %17 = arith.negf %16 : vector<1x64xf32>
    %18 = math.exp %17 : vector<1x64xf32>
    %cst_11 = arith.constant 1.000000e+00 : f32
    %19 = vector.broadcast %cst_11 : f32 to vector<1x64xf32>
    %20 = arith.addf %19, %18 : vector<1x64xf32>
    %21 = arith.divf %19, %20 : vector<1x64xf32>
    %c0_12 = arith.constant 0 : index
    %c0_13 = arith.constant 0 : index
    %c0_14 = arith.constant 0 : index
    %22 = vector.load %arg7[%c0_12, %c0_13, %c0_14] : memref<1x1x64xf32, #tpu.memory_space<vmem>>, vector<1x1x64xf32>
    %23 = vector.shape_cast %22 : vector<1x1x64xf32> to vector<1x64xf32>
    %24 = vector.shape_cast %21 : vector<1x64xf32> to vector<1x1x64xf32>
    tpu.vector_store %arg7[%c0_12, %c0_13, %c0_14], %24 {strides = array<i32>} : memref<1x1x64xf32, #tpu.memory_space<vmem>>, vector<1x1x64xf32>,
    return
  }
  func.func @transform_0(%arg0: i32, %arg1: i32) -> (i32, i32, i32) {
    %c0_i32 = arith.constant 0 : i32
    %c0_i32_0 = arith.constant 0 : i32
    return %arg0, %c0_i32, %arg1 : i32, i32, i32
  }
  func.func @transform_1(%arg0: i32, %arg1: i32) -> (i32, i32) {
    %c0_i32 = arith.constant 0 : i32
    %c0_i32_0 = arith.constant 0 : i32
    %c0_i32_1 = arith.constant 0 : i32
    return %c0_i32, %c0_i32_0 : i32, i32
  }
  func.func @transform_2(%arg0: i32, %arg1: i32) -> (i32, i32) {
    %c0_i32 = arith.constant 0 : i32
    %c0_i32_0 = arith.constant 0 : i32
    %c0_i32_1 = arith.constant 0 : i32
    return %c0_i32, %c0_i32_0 : i32, i32
  }
  func.func @transform_3(%arg0: i32, %arg1: i32) -> (i32, i32) {
    %c0_i32 = arith.constant 0 : i32
    %c0_i32_0 = arith.constant 0 : i32
    %c0_i32_1 = arith.constant 0 : i32
    return %c0_i32, %c0_i32_0 : i32, i32
  }
  func.func @transform_4(%arg0: i32, %arg1: i32) -> i32 {
    %c0_i32 = arith.constant 0 : i32
    %c0_i32_0 = arith.constant 0 : i32
    return %c0_i32 : i32
  }
  func.func @transform_5(%arg0: i32, %arg1: i32) -> (i32, i32, i32) {
    %c0_i32 = arith.constant 0 : i32
    %c0_i32_0 = arith.constant 0 : i32
    return %arg0, %c0_i32, %arg1 : i32, i32, i32
  }
}

</mosaic_0001>

<bundles_post_ra>
// kernel: tpu_custom_call.1
= control target key start
LH: loop header
LB: loop body
LE: loop exit
PB: predicated region body
PF: predicated region fallthrough
CT: control target
= control target key end

     0   :  { %s1266_s0 = inlined_call_operand.vmem [shape: f32[2,20,64], index: 0, kind: input, shape index: {}]   ;;  %s1267_s1 = inlined_call_operand.vmem [shape: f32[2,20], index: 1, kind: input, shape index: {}]   ;;  %s1268_s2 = inlined_call_operand.vmem [shape: f32[2,1], index: 2, kind: input, shape index: {}]   ;;  %s1269_s3 = inlined_call_operand.vmem [shape: f32[2,1], index: 3, kind: input, shape index: {}]   ;;  %s1270_s4 = inlined_call_operand.<no memory space> [shape: f32[1], index: 4, kind: input, shape index: {}]   ;;  %s1271_s5 = inlined_call_operand.hbm [shape: f32[2,1,64], index: 5, kind: output, shape index: {}]  }
   0x1   :  { %10 = sst [smem:[#allocation2]] %s1270_s4 }
   0x2   :  { %11 = vsyncpa [#allocation4], 0 }
   0x3   :  { %13 = vsyncpa [#allocation4 + $0x1], 0  ;;  %s1116_s20 = smov 0   ;;  %s1118_s21 = smov 0  }
   0x4   :  { %s1120_s22 = smov 0   ;;  %s1122_s23 = smov 0  }
   0x5   :  { %s1124_s24 = smov 0   ;;  %s1126_s25 = smov 0  }
   0x6 LB: > { %s849_s4 = sadd.s32 4294967295, %s1077_s25   ;;  %s850_s26 = sadd.s32 4294967294, %s1077_s25   ;;  %s1077_s25 = sphi %s1126_s25, %s19_s25   ;;  %s1073_s24 = sphi %s1124_s24, %s1278_s24   ;;  %s1069_s23 = sphi %s1122_s23, %s1277_s23   ;;  %s1065_s22 = sphi %s1120_s22, %s1276_s22   ;;  %s1061_s21 = sphi %s1118_s21, %s1275_s21   ;;  %s1057_s20 = sphi %s1116_s20, %s1274_s20  }
   0x7   : > { %s31_s27 = sadd.s32 1, %s1073_s24  ;;  %s152_s28 = sadd.s32 1, %s1065_s22 }
   0x8   : > { %p33_p0 = scmp.ge.s32.totalorder %s31_s27, 2  ;;  %p162_p1 = scmp.ne.s32.totalorder %s1065_s22, %s1061_s21 }
   0x9   : > { %p163_p2 = scmp.eq.s32.totalorder %s849_s4, 1  ;;  %p168_p3 = scmp.ne.s32.totalorder %s1061_s21, %s1057_s20 }
   0xa   : > { %s1280_s27 = smov (%p33_p0, %s31_s27), 0  ;;  %p169_p5 = scmp.eq.s32.totalorder %s850_s26, 1 }
   0xb   : > { %p1156_p4 = por %p163_p2, %p162_p1  ;;  %s147_s30 = ssub.s32 %s1073_s24, %s1280_s27 }
   0xc   : > { %p853_p6 = scmp.ge.s32.totalorder %s1077_s25, 1  ;;  %p150_p7 = scmp.eq.s32.totalorder %s147_s30, 0 }
   0xd   : > { %p1163_p8 = por %p169_p5, %p168_p3  ;;  %p210_p9 = scmp.lt.s32.totalorder %s1077_s25, 3 }
   0xe   : > { %s1169_s7 = scalar_select %p150_p7, %s1065_s22, %s152_s28  }
   0xf   : > { %p211_p10 = pnand %p853_p6, %p210_p9 }
  0x10   : > { %p240_p11 = scmp.lt.s32.totalorder (!%p211_p10), %s1069_s23, 1  ;;  %s754_s19 = sld [smem:[#allocation2]] (!%p211_p10) }
  0x11   : > { %214 = sbr.rel (%p211_p10) target bundleno = 316 (0x13c), region = 40  ;;  %s238_s4 = sand.u32 (!%p211_p10), 1, %s1061_s21  }
  0x12   : > { %s856_s26 = sshll.u32 (!%p211_p10), %s1069_s23, 4  ;;  %s239_s28 = scalar_lea.vmem (!%p211_p10), [#allocation3], %s238_s4 }
  0x13   : > { %s779_s30 = sshll.u32 (!%p211_p10), %s239_s28, 4  ;;  %s1226_s10 = scalar_lea.hbm (!%p211_p10), %s1271_s5, %s856_s26  ;;  %s780_s30 = int_to_ptr.vmem [resolvable:$true] %s779_s30 }
  0x14   : > { %s766_s11 = scalar_lea.sflag (!%p211_p10), [#allocation4], %s238_s4 }
  0x16   : > { %v248_v0 = vld [vmem:[%s1267_s1] sm:$0x3]  ;;  %v1079_v1 = vmov 0.0   ;;  %vm258_vm0 = vcmask 162816   ;;  %s241_s12 = scalar_select %p240_p11, %s1069_s23, 1  ;;  %vm1080_vm1 = vmmov 0   ;;  %v755_v58 = vstv %s754_s19 }
  0x17   : > { %883 = vmatprep.subr.mxu0 %v1079_v1  ;;  %892 = vmatprep.subr.mxu1 %v1079_v1  ;;  %v252_v2 = vld [vmem:[%s1268_s2] sm:$0x3]  ;;  %v260_v3 = vsel %vm258_vm0, %v248_v0, 0  ;;  %v1081_v5 = vmov 0   ;;  %vm262_vm2 = vcmask 1043456   ;;  %vm746_vm3 = vcmask 517120  }
  0x18   : > { %889 = vmatprep.mubr.msk.f32.mxu0 %vm1080_vm1, %v1079_v1  ;;  %898 = vmatprep.mubr.msk.f32.mxu1 %vm1080_vm1, %v1079_v1  ;;  %v1185_v4 = vand.u32 4294901760, %v260_v3  ;;  %s937_s13 = smul.u32 24, %s241_s12  ;;  %v739_v7 = vld [vmem:[%s1269_s3] sm:$0x3]  ;;  %vm763_vm4 = vcmask 516096   ;;  %s1001_s12 = scalar_lea.vmem %s780_s30, 16 }
  0x19   : > { %996 = vset.pattern.permute.xlu0 %v1081_v5  ;;  %p1002_p12 = scmp.ne.s32.totalorder %s780_s30, %s1001_s12 }
  0x1a   : > { %255 = vperm.xlu0 %996, %v252_v2   ;;  %v335_v6 = vsub.f32 %v260_v3, %v1185_v4  ;;  %s247_s18 = scalar_lea.vmem %s1266_s0, %s937_s13  ;;  %s1082_s13 = smov [#allocation3]  }
  0x1b   : > { %v251_v8 = vld [vmem:[%s247_s18 + $0x10] sm:$0xf]  ;;  %v250_v9 = vld [vmem:[%s247_s18 + $0x8] sm:$0xff]  ;;  %v249_v10 = vld [vmem:[%s247_s18] sm:$0xff]  ;;  %p1003_p13 = pnand %p1002_p12, %p1156_p4  ;;  %s1005_s14 = sshll.u32 %s1082_s13, 4  ;;  %s1006_s14 = int_to_ptr.vmem [resolvable:$false] %s1005_s14 }
  0x1c   : > { %v336_v11 = vand.u32 4294901760, %v335_v6  ;;  %v264_v12 = vsel %vm262_vm2, %v251_v8, 0  ;;  %v296_v13 = vand.u32 4294901760, %v250_v9  ;;  %v299_v14 = vand.u32 4294901760, %v249_v10  ;;  %s1007_s23 = scalar_lea.vmem %s1006_s14, 32  ;;  %p1008_p1 = scmp.lt.s32.totalorder %s780_s30, %s1006_s14 }
  0x1d   : > { %v293_v15 = vand.u32 4294901760, %v264_v12  ;;  %p1004_p0 = pneg %p1003_p13  ;;  %p1009_p2 = scmp.lt.s32.totalorder %s1007_s23, %s1001_s12 }
  0x1e   : > { %742 = vperm.xlu0 %996, %v739_v7   ;;  %v337_v16 = vsub.f32 %v335_v6, %v336_v11  ;;  %v379_v17 = vsub.f32 %v250_v9, %v296_v13  ;;  %v386_v18 = vsub.f32 %v249_v10, %v299_v14 }
  0x1f   : > { %884 = vmatpush3.msra.mxu0 %v293_v15  ;;  %v372_v19 = vsub.f32 %v264_v12, %v293_v15  ;;  %p1010_p3 = por %p1009_p2, %p1008_p1 }
  0x20   : > { %885 = vmatprep.subr.mxu0 %v1079_v1  ;;  %v338_v20 = vand.u32 4294901760, %v337_v16  ;;  %v380_v21 = vand.u32 4294901760, %v379_v17  ;;  %v387_v22 = vand.u32 4294901760, %v386_v18 }
  0x21   : > { %886 = vmatpush3.msra.mxu0 %v296_v13  ;;  %v373_v23 = vand.u32 4294901760, %v372_v19  ;;  %p1011_p5 = pnand %p1010_p3, %p1004_p0 }
  0x22   : > { %887 = vmatprep.subr.mxu0 %v1079_v1  ;;  %v381_v24 = vsub.f32 %v379_v17, %v380_v21  ;;  %v388_v26 = vsub.f32 %v386_v18, %v387_v22 }
  0x23   : > { %888 = vmatpush3.msra.mxu0 %v299_v14  ;;  %v374_v25 = vsub.f32 %v372_v19, %v373_v23 }
  0x24   : > { %901 = vmatprep.subr.mxu0 %v1079_v1  ;;  %890 = vmatmul.mubr.f32.vlgmr.msra.gmra.mxu0 %v338_v20  ;;  %v382_v28 = vand.u32 4294901760, %v381_v24  ;;  %v389_v29 = vand.u32 4294901760, %v388_v26 }
  0x25   : > { %v375_v27 = vand.u32 4294901760, %v374_v25  ;;  %902 = vmatpush3.msra.mxu0 %v372_v19  ;;  %907 = vmatprep.mubr.msk.f32.mxu0 %vm1080_vm1, %v1079_v1 }
  0x26   : > { %903 = vmatprep.subr.mxu0 %v1079_v1 }
  0x27   : > { %893 = vmatpush3.msra.mxu1 %v375_v27  ;;  %904 = vmatpush3.msra.mxu0 %v379_v17 }
  0x28   : > { %894 = vmatprep.subr.mxu1 %v1079_v1  ;;  %905 = vmatprep.subr.mxu0 %v1079_v1 }
  0x29   : > { %895 = vmatpush3.msra.mxu1 %v382_v28  ;;  %906 = vmatpush3.msra.mxu0 %v386_v18 }
  0x2a   : > { %896 = vmatprep.subr.mxu1 %v1079_v1  ;;  %919 = vmatprep.subr.mxu0 %v1079_v1 }
  0x2b   : > { %897 = vmatpush3.msra.mxu1 %v389_v29  ;;  %908 = vmatmul.mubr.f32.vlgmr.msra.gmra.mxu0 %v335_v6 }
  0x2c   : > { %899 = vmatmul.mubr.f32.vlgmr.msra.gmra.mxu1 %v1185_v4  ;;  %910 = vmatprep.subr.mxu1 %v1079_v1 }
  0x2d   : > { %911 = vmatpush3.msra.mxu1 %v293_v15  ;;  %920 = vmatpush3.msra.mxu0 %v373_v23 }
  0x2e   : > { %912 = vmatprep.subr.mxu1 %v1079_v1  ;;  %921 = vmatprep.subr.mxu0 %v1079_v1 }
  0x2f   : > { %913 = vmatpush3.msra.mxu1 %v296_v13  ;;  %916 = vmatprep.mubr.msk.f32.mxu1 %vm1080_vm1, %v1079_v1 }
  0x30   : > { %914 = vmatprep.subr.mxu1 %v1079_v1  ;;  %922 = vmatpush3.msra.mxu0 %v380_v21 }
  0x31   : > { %915 = vmatpush3.msra.mxu1 %v299_v14  ;;  %923 = vmatprep.subr.mxu0 %v1079_v1 }
  0x32   : > { %917 = vmatmul.mubr.f32.vlgmr.msra.gmra.mxu1 %v336_v11  ;;  %928 = vmatprep.subr.mxu1 %v1079_v1 }
  0x33   : > { %924 = vmatpush3.msra.mxu0 %v387_v22  ;;  %925 = vmatprep.mubr.msk.f32.mxu0 %vm1080_vm1, %v1079_v1 }
  0x34   : > { %929 = vmatpush3.msra.mxu1 %v293_v15  ;;  %926 = vmatmul.mubr.f32.vlgmr.msra.gmra.mxu0 %v1185_v4 }
  0x35   : > { %930 = vmatprep.subr.mxu1 %v1079_v1  ;;  %934 = vmatprep.mubr.msk.f32.mxu1 %vm1080_vm1, %v1079_v1 }
  0x36   : > { %931 = vmatpush3.msra.mxu1 %v296_v13 }
  0x37   : > { %932 = vmatprep.subr.mxu1 %v1079_v1 }
  0x38   : > { %933 = vmatpush3.msra.mxu1 %v299_v14 }
  0x39   : > { %935 = vmatmul.mubr.f32.vlgmr.msra.gmra.mxu1 %v1185_v4 }
  0x95   : > { %v256_v31 = vpop.permute.xlu0 %255 }
  0x99   : > { %v743_v50 = vpop.permute.xlu0 %742 }
  0xe4   : > { %v340_v30 = vpop.f32.mrf.mxu0 }
  0xe5   : > { %v341_v33 = vadd.f32 %v340_v30, %v256_v31 }
  0xe6   : > { %v891_v32 = vpop.f32.mrf.mxu0 }
  0xeb   : > { %v504_v34 = vpop.f32.mrf.mxu0 }
  0xec   : > { %v426_v35 = vpop.f32.mrf.mxu1 }
  0xed   : > { %v427_v36 = vadd.f32 %v426_v35, %v341_v33  ;;  %v909_v37 = vpop.f32.mrf.mxu0 }
  0xee   : > { %v900_v38 = vpop.f32.mrf.mxu1 }
  0xef   : > { %v505_v39 = vadd.f32 %v504_v34, %v427_v36 }
  0xf2   : > { %v580_v40 = vpop.f32.mrf.mxu1 }
  0xf3   : > { %v581_v41 = vadd.f32 %v580_v40, %v505_v39 }
  0xf4   : > { %v918_v42 = vpop.f32.mrf.mxu1  ;;  %v660_v43 = vpop.f32.mrf.mxu0 }
  0xf5   : > { %v661_v45 = vadd.f32 %v660_v43, %v581_v41 }
  0xf6   : > { %v927_v44 = vpop.f32.mrf.mxu0 }
  0xf9   : > { %v734_v46 = vpop.f32.mrf.mxu1 }
  0xfa   : > { %v735_v47 = vadd.f32 %v734_v46, %v661_v45 }
  0xfb   : > { %v936_v48 = vpop.f32.mrf.mxu1 }
  0xfc   : > { %v738_v49 = vmax.f32 %v735_v47, 0.0 }
  0xfe   : > { %v745_v51 = vmul.f32 %v743_v50, %v738_v49 }
 0x100   : > { %v747_v52 = vsel %vm746_vm3, %v745_v51, 0.0 }
 0x101   : > { %v748_v53 = vrot.slane %v747_v52, 4 }
 0x103   : > { %v749_v54 = vadd.f32 %v748_v53, %v747_v52 }
 0x105   : > { %v750_v55 = vrot.slane %v749_v54, 2 }
 0x107   : > { %v751_v56 = vadd.f32 %v750_v55, %v749_v54 }
 0x109   : > { %v752_v57 = vrot.slane %v751_v56, 1 }
 0x10b   : > { %v753_v59 = vadd.f32 %v752_v57, %v751_v56 }
 0x10d   : > { %v756_v60 = vadd.f32 %v755_v58, %v753_v59 }
 0x10f   : > { %v855_v61 = vmul.f32 -1.442695, %v756_v60 }
 0x111   : > { %997 = vpow2.f32 %v855_v61 }
 0x11e   : > { %v998_v62 = vpop.eup %997 }
 0x11f   : > { %v760_v63 = vadd.f32 1.0, %v998_v62 }
 0x121   : > { %999 = vrcp.f32 %v760_v63 }
 0x12e   : > { %v1000_v0 = vpop.eup %999 }
 0x12f   : > { %764 = vst.msk [vmem:[%s239_s28] sm:$0x1] %vm763_vm4, %v1000_v0 }
 0x130   : > { %1014 = shalt.err (!%p1011_p5)
}
 0x131   : > { %s1015_s15 = scalar_lea.hbm %s1226_s10, 16  ;;  %s1019_s18 = scalar_lea.hbm %s1271_s5, 32 }
 0x132   : > { %p1016_p6 = scmp.ne.s32.totalorder %s1226_s10, %s1015_s15  ;;  %p1020_p10 = scmp.lt.s32.totalorder %s1226_s10, %s1271_s5 }
 0x133   : > { %p1021_p11 = scmp.lt.s32.totalorder %s1019_s18, %s1015_s15 }
 0x134   : > { %p1017_p7 = pnand %p1016_p6, %p1156_p4 }
 0x135   : > { %p1022_p12 = por %p1021_p11, %p1020_p10 }
 0x136   : > { %p1018_p9 = pneg %p1017_p7 }
 0x138   : > { %p1023_p13 = pnand %p1022_p12, %p1018_p9 }
 0x13a   : > { %1026 = shalt.err (!%p1023_p13)
}
 0x13b   : > { %938 = dma.vmem_to_hbm [thread:$0]  (%p1156_p4), %s780_s30, 16, %s1226_s10, %s766_s11  }
 0x13c PF: > { %p944_p0 = scmp.ge.s32.totalorder %s1077_s25, 2  ;;  %s791_s26 = sand.u32 1, %s1057_s20  }
 0x13d   : > { %s792_s28 = scalar_lea.sflag [#allocation4], %s791_s26 }
 0x13e   : > { %p941_p1 = pnand %p944_p0, %p1163_p8 }
 0x140   : > { %p942_p2 = pneg %p941_p1 }
 0x142   : > { %1052 = dma.done.wait (%p942_p2), %s792_s28, 16  }
 0x143   : > { %1054 = vsyncadd (%p942_p2), %s792_s28, 4294967280  ;;  %s19_s25 = sadd.s32 1, %s1077_s25   ;;  %s1274_s20 = smov %s1061_s21 }
 0x144   : > { %p16_p3 = scmp.ge.s32.totalorder %s19_s25, 4   ;;  %s1275_s21 = smov %s1065_s22 }
 0x145   : > { %s1276_s22 = smov %s1169_s7  ;;  %s1277_s23 = smov %s1073_s24 }
 0x146   : > { %s1278_s24 = smov %s1280_s27  ;;  %18 = sbr.rel (!%p16_p3) target bundleno = 6 (0x6), region = 75 }
 0x14b   :  { %796 = vsyncpa [#allocation4], 1 }
 0x14c   :  { %798 = vsyncpa [#allocation4 + $0x1], 1 }

</bundles_post_ra>
